<compile_context>
chip_gen: v7x
topology: tpu7x:2x2x1
jax: 0.10.0
libtpu: 0.0.40
codegen_flags: <defaults>
</compile_context>

<pallas_src>
import jax
import jax.numpy as jnp
from jax.experimental import pallas as pl
from jax.experimental.pallas import tpu as pltpu


def lstm_head_kernel(x_ref, wih_ref, whh_ref, b_ref, wout_ref, bout_ref, o_ref):
    # x_ref:    (T*B, I)   time-major input, row = t*B + b
    # wih_ref:  (I, 4H)    transposed weight_ih, gate columns ordered [i, f, o, g]
    # whh_ref:  (H, 4H)    transposed weight_hh, gate columns ordered [i, f, o, g]
    # b_ref:    (1, 4H)    b_ih + b_hh, same gate order
    # wout_ref: (1, H)     output Linear weight, pre-scaled by 1/T (time mean folded)
    # bout_ref: (1, 1)     output Linear bias
    # o_ref:    (B, 1)     final prediction
    H = whh_ref.shape[0]
    B = o_ref.shape[0]
    T = x_ref.shape[0] // B

    wih = wih_ref[...]
    whh = whh_ref[...]
    b = b_ref[...]

    # Hoisted input projection: all timesteps in one MXU matmul, bias folded in.
    # (T*B, I) x (I, 4H) -> (T*B, 4H)
    pre = jnp.dot(x_ref[...], wih, preferred_element_type=jnp.float32) + b

    h = jnp.zeros((B, H), jnp.float32)
    c = jnp.zeros((B, H), jnp.float32)
    acc = jnp.zeros((B, H), jnp.float32)

    # Fully unrolled recurrence (T is static and small). Per step: one small MXU dot,
    # a 3H-lane sigmoid + H-lane tanh (disjoint lane ranges thanks to the [i,f,o,g]
    # gate ordering), and the elementwise cell/hidden combine.
    for t in range(T):
        # Static, sublane-aligned row block of the precomputed pre-gates for step t.
        gates = pre[t * B:(t + 1) * B, :] + jnp.dot(
            h, whh, preferred_element_type=jnp.float32)      # (B, 4H)

        sig = jax.nn.sigmoid(gates[:, 0:3 * H])              # i | f | o  lanes
        g_g = jnp.tanh(gates[:, 3 * H:4 * H])                 # g (cell) lanes
        i_g = sig[:, 0 * H:1 * H]
        f_g = sig[:, 1 * H:2 * H]
        o_g = sig[:, 2 * H:3 * H]

        c = f_g * c + i_g * g_g
        h = o_g * jnp.tanh(c)
        acc = acc + h

    # Time-mean + Linear(H,1): 1/T already folded into wout, so this is just a
    # broadcast multiply + lane reduction (no 1-lane-wide MXU dot, no extra scale).
    out = jnp.sum(acc * wout_ref[...], axis=-1, keepdims=True) + bout_ref[...]
    o_ref[...] = out.astype(o_ref.dtype)


def lstm_forward(x, params):
    """x: (B, T, I) batch-first, float32. Returns (B, 1)."""
    wih_t, whh_t, b, wout_row, bout = params
    B, T, I = x.shape
    # Time-major, flattened for the hoisted projection. (Tiny copy fused by XLA;
    # keeps every in-kernel per-step slice a free, sublane-aligned row block.)
    x_tm = jnp.transpose(x, (1, 0, 2)).reshape(T * B, I)
    return pl.pallas_call(
        lstm_head_kernel,
        out_shape=jax.ShapeDtypeStruct((B, 1), jnp.float32),
        in_specs=[pl.BlockSpec(memory_space=pltpu.MemorySpace.VMEM)] * 6,
        out_specs=pl.BlockSpec(memory_space=pltpu.MemorySpace.VMEM),
    )(x_tm, wih_t, whh_t, b, wout_row, bout)


def pack_params(w_ih, w_hh, b_ih, b_hh, w_out, b_out, T):
    """Convert PyTorch-layout LSTM/Linear params (gate order [i,f,g,o]) to the
    kernel layout: transposed weights with gate columns reordered to [i,f,o,g],
    fused bias, and the 1/T time-mean folded into the output weight."""
    H = w_hh.shape[1]
    perm = jnp.concatenate([
        jnp.arange(0, H),            # i
        jnp.arange(H, 2 * H),        # f
        jnp.arange(3 * H, 4 * H),    # o
        jnp.arange(2 * H, 3 * H),    # g
    ])
    wih_t = jnp.transpose(w_ih)[:, perm]          # (I, 4H)
    whh_t = jnp.transpose(w_hh)[:, perm]          # (H, 4H)
    b = (b_ih + b_hh)[perm][None, :]              # (1, 4H)
    wout_row = w_out / float(T)                   # (1, H)  time-mean folded in
    bout = b_out[None, :]                         # (1, 1)
    return wih_t, whh_t, b, wout_row, bout


if __name__ == "__main__":
    B, T, I, H = 8, 8, 16, 32

    key = jax.random.PRNGKey(0)
    kx, k1, k2, k3, k4, k5, k6 = jax.random.split(key, 7)

    x = jax.random.normal(kx, (B, T, I), jnp.float32)

    # Deterministic synthetic parameters, PyTorch nn.LSTM / nn.Linear shapes.
    s = 1.0 / float(jnp.sqrt(H))
    w_ih = jax.random.uniform(k1, (4 * H, I), jnp.float32, -s, s)   # weight_ih_l0
    w_hh = jax.random.uniform(k2, (4 * H, H), jnp.float32, -s, s)   # weight_hh_l0
    b_ih = jax.random.uniform(k3, (4 * H,), jnp.float32, -s, s)
    b_hh = jax.random.uniform(k4, (4 * H,), jnp.float32, -s, s)
    w_out = jax.random.uniform(k5, (1, H), jnp.float32, -s, s)      # output.weight
    b_out = jax.random.uniform(k6, (1,), jnp.float32, -s, s)        # output.bias

    params = pack_params(w_ih, w_hh, b_ih, b_hh, w_out, b_out, T)

    out = jax.block_until_ready(lstm_forward(x, params))

    # Pure-JAX reference of the PyTorch forward (gate order [i, f, g, o]).
    def reference(x):
        h = jnp.zeros((B, H), jnp.float32)
        c = jnp.zeros((B, H), jnp.float32)
        acc = jnp.zeros((B, H), jnp.float32)
        for t in range(T):
            gates = x[:, t, :] @ w_ih.T + h @ w_hh.T + b_ih + b_hh
            i = jax.nn.sigmoid(gates[:, :H])
            f = jax.nn.sigmoid(gates[:, H:2 * H])
            g = jnp.tanh(gates[:, 2 * H:3 * H])
            o = jax.nn.sigmoid(gates[:, 3 * H:])
            c = f * c + i * g
            h = o * jnp.tanh(c)
            acc = acc + h
        return (acc / T) @ w_out.T + b_out

    ref_out = reference(x)
    assert out.shape == (B, 1), out.shape
    assert jnp.allclose(out, ref_out, atol=1e-5, rtol=1e-5), (out, ref_out)
    print("KERNEL_OK")
</pallas_src>

<mosaic_0001>
module attributes {stable_mosaic.version = 11 : i64} {
  func.func @lstm_head_kernel(%arg0: memref<64x16xf32, #tpu.memory_space<vmem>>, %arg1: memref<16x128xf32, #tpu.memory_space<vmem>>, %arg2: memref<32x128xf32, #tpu.memory_space<vmem>>, %arg3: memref<1x128xf32, #tpu.memory_space<vmem>>, %arg4: memref<1x32xf32, #tpu.memory_space<vmem>>, %arg5: memref<1x1xf32, #tpu.memory_space<vmem>>, %arg6: memref<8x1xf32, #tpu.memory_space<vmem>>) attributes {dimension_semantics = [], scalar_prefetch = 0 : i64, scratch_operands = 0 : i64, tpu.core_type = #tpu.core_type<tc>} {
    %c0 = arith.constant 0 : index
    %c0_0 = arith.constant 0 : index
    %0 = vector.load %arg1[%c0, %c0_0] : memref<16x128xf32, #tpu.memory_space<vmem>>, vector<16x128xf32>
    %c0_1 = arith.constant 0 : index
    %c0_2 = arith.constant 0 : index
    %1 = vector.load %arg2[%c0_1, %c0_2] : memref<32x128xf32, #tpu.memory_space<vmem>>, vector<32x128xf32>
    %c0_3 = arith.constant 0 : index
    %c0_4 = arith.constant 0 : index
    %2 = vector.load %arg3[%c0_3, %c0_4] : memref<1x128xf32, #tpu.memory_space<vmem>>, vector<1x128xf32>
    %c0_5 = arith.constant 0 : index
    %c0_6 = arith.constant 0 : index
    %3 = vector.load %arg0[%c0_5, %c0_6] : memref<64x16xf32, #tpu.memory_space<vmem>>, vector<64x16xf32>
    %cst = arith.constant dense<0.000000e+00> : vector<64x128xf32>
    %4 = tpu.matmul %3, %0, %cst {dimension_numbers = #tpu.dot_dimension_numbers<[1], [0], [0], [1], [0, 0, 1, 1], [], []>} : vector<64x16xf32>, vector<16x128xf32>, vector<64x128xf32> -> vector<64x128xf32>
    %5 = vector.broadcast %2 : vector<1x128xf32> to vector<64x128xf32>
    %6 = arith.addf %4, %5 : vector<64x128xf32>
    %cst_7 = arith.constant 0.000000e+00 : f32
    %7 = vector.broadcast %cst_7 : f32 to vector<8x32xf32>
    %cst_8 = arith.constant 0.000000e+00 : f32
    %8 = vector.broadcast %cst_8 : f32 to vector<8x32xf32>
    %cst_9 = arith.constant 0.000000e+00 : f32
    %9 = vector.broadcast %cst_9 : f32 to vector<8x32xf32>
    %10 = vector.extract_strided_slice %6 {offsets = [0, 0], sizes = [8, 128], strides = [1, 1]} : vector<64x128xf32> to vector<8x128xf32>
    %cst_10 = arith.constant dense<0.000000e+00> : vector<8x128xf32>
    %11 = tpu.matmul %7, %1, %cst_10 {dimension_numbers = #tpu.dot_dimension_numbers<[1], [0], [0], [1], [0, 0, 1, 1], [], []>} : vector<8x32xf32>, vector<32x128xf32>, vector<8x128xf32> -> vector<8x128xf32>
    %12 = arith.addf %10, %11 : vector<8x128xf32>
    %13 = vector.extract_strided_slice %12 {offsets = [0, 0], sizes = [8, 96], strides = [1, 1]} : vector<8x128xf32> to vector<8x96xf32>
    %14 = arith.negf %13 : vector<8x96xf32>
    %15 = math.exp %14 : vector<8x96xf32>
    %cst_11 = arith.constant 1.000000e+00 : f32
    %16 = vector.broadcast %cst_11 : f32 to vector<8x96xf32>
    %17 = arith.addf %16, %15 : vector<8x96xf32>
    %18 = arith.divf %16, %17 : vector<8x96xf32>
    %19 = vector.extract_strided_slice %12 {offsets = [0, 96], sizes = [8, 32], strides = [1, 1]} : vector<8x128xf32> to vector<8x32xf32>
    %20 = math.tanh %19 : vector<8x32xf32>
    %21 = vector.extract_strided_slice %18 {offsets = [0, 0], sizes = [8, 32], strides = [1, 1]} : vector<8x96xf32> to vector<8x32xf32>
    %22 = vector.extract_strided_slice %18 {offsets = [0, 32], sizes = [8, 32], strides = [1, 1]} : vector<8x96xf32> to vector<8x32xf32>
    %23 = vector.extract_strided_slice %18 {offsets = [0, 64], sizes = [8, 32], strides = [1, 1]} : vector<8x96xf32> to vector<8x32xf32>
    %24 = arith.mulf %22, %8 : vector<8x32xf32>
    %25 = arith.mulf %21, %20 : vector<8x32xf32>
    %26 = arith.addf %24, %25 : vector<8x32xf32>
    %27 = math.tanh %26 : vector<8x32xf32>
    %28 = arith.mulf %23, %27 : vector<8x32xf32>
    %29 = arith.addf %9, %28 : vector<8x32xf32>
    %30 = vector.extract_strided_slice %6 {offsets = [8, 0], sizes = [8, 128], strides = [1, 1]} : vector<64x128xf32> to vector<8x128xf32>
    %cst_12 = arith.constant dense<0.000000e+00> : vector<8x128xf32>
    %31 = tpu.matmul %28, %1, %cst_12 {dimension_numbers = #tpu.dot_dimension_numbers<[1], [0], [0], [1], [0, 0, 1, 1], [], []>} : vector<8x32xf32>, vector<32x128xf32>, vector<8x128xf32> -> vector<8x128xf32>
    %32 = arith.addf %30, %31 : vector<8x128xf32>
    %33 = vector.extract_strided_slice %32 {offsets = [0, 0], sizes = [8, 96], strides = [1, 1]} : vector<8x128xf32> to vector<8x96xf32>
    %34 = arith.negf %33 : vector<8x96xf32>
    %35 = math.exp %34 : vector<8x96xf32>
    %cst_13 = arith.constant 1.000000e+00 : f32
    %36 = vector.broadcast %cst_13 : f32 to vector<8x96xf32>
    %37 = arith.addf %36, %35 : vector<8x96xf32>
    %38 = arith.divf %36, %37 : vector<8x96xf32>
    %39 = vector.extract_strided_slice %32 {offsets = [0, 96], sizes = [8, 32], strides = [1, 1]} : vector<8x128xf32> to vector<8x32xf32>
    %40 = math.tanh %39 : vector<8x32xf32>
    %41 = vector.extract_strided_slice %38 {offsets = [0, 0], sizes = [8, 32], strides = [1, 1]} : vector<8x96xf32> to vector<8x32xf32>
    %42 = vector.extract_strided_slice %38 {offsets = [0, 32], sizes = [8, 32], strides = [1, 1]} : vector<8x96xf32> to vector<8x32xf32>
    %43 = vector.extract_strided_slice %38 {offsets = [0, 64], sizes = [8, 32], strides = [1, 1]} : vector<8x96xf32> to vector<8x32xf32>
    %44 = arith.mulf %42, %26 : vector<8x32xf32>
    %45 = arith.mulf %41, %40 : vector<8x32xf32>
    %46 = arith.addf %44, %45 : vector<8x32xf32>
    %47 = math.tanh %46 : vector<8x32xf32>
    %48 = arith.mulf %43, %47 : vector<8x32xf32>
    %49 = arith.addf %29, %48 : vector<8x32xf32>
    %50 = vector.extract_strided_slice %6 {offsets = [16, 0], sizes = [8, 128], strides = [1, 1]} : vector<64x128xf32> to vector<8x128xf32>
    %cst_14 = arith.constant dense<0.000000e+00> : vector<8x128xf32>
    %51 = tpu.matmul %48, %1, %cst_14 {dimension_numbers = #tpu.dot_dimension_numbers<[1], [0], [0], [1], [0, 0, 1, 1], [], []>} : vector<8x32xf32>, vector<32x128xf32>, vector<8x128xf32> -> vector<8x128xf32>
    %52 = arith.addf %50, %51 : vector<8x128xf32>
    %53 = vector.extract_strided_slice %52 {offsets = [0, 0], sizes = [8, 96], strides = [1, 1]} : vector<8x128xf32> to vector<8x96xf32>
    %54 = arith.negf %53 : vector<8x96xf32>
    %55 = math.exp %54 : vector<8x96xf32>
    %cst_15 = arith.constant 1.000000e+00 : f32
    %56 = vector.broadcast %cst_15 : f32 to vector<8x96xf32>
    %57 = arith.addf %56, %55 : vector<8x96xf32>
    %58 = arith.divf %56, %57 : vector<8x96xf32>
    %59 = vector.extract_strided_slice %52 {offsets = [0, 96], sizes = [8, 32], strides = [1, 1]} : vector<8x128xf32> to vector<8x32xf32>
    %60 = math.tanh %59 : vector<8x32xf32>
    %61 = vector.extract_strided_slice %58 {offsets = [0, 0], sizes = [8, 32], strides = [1, 1]} : vector<8x96xf32> to vector<8x32xf32>
    %62 = vector.extract_strided_slice %58 {offsets = [0, 32], sizes = [8, 32], strides = [1, 1]} : vector<8x96xf32> to vector<8x32xf32>
    %63 = vector.extract_strided_slice %58 {offsets = [0, 64], sizes = [8, 32], strides = [1, 1]} : vector<8x96xf32> to vector<8x32xf32>
    %64 = arith.mulf %62, %46 : vector<8x32xf32>
    %65 = arith.mulf %61, %60 : vector<8x32xf32>
    %66 = arith.addf %64, %65 : vector<8x32xf32>
    %67 = math.tanh %66 : vector<8x32xf32>
    %68 = arith.mulf %63, %67 : vector<8x32xf32>
    %69 = arith.addf %49, %68 : vector<8x32xf32>
    %70 = vector.extract_strided_slice %6 {offsets = [24, 0], sizes = [8, 128], strides = [1, 1]} : vector<64x128xf32> to vector<8x128xf32>
    %cst_16 = arith.constant dense<0.000000e+00> : vector<8x128xf32>
    %71 = tpu.matmul %68, %1, %cst_16 {dimension_numbers = #tpu.dot_dimension_numbers<[1], [0], [0], [1], [0, 0, 1, 1], [], []>} : vector<8x32xf32>, vector<32x128xf32>, vector<8x128xf32> -> vector<8x128xf32>
    %72 = arith.addf %70, %71 : vector<8x128xf32>
    %73 = vector.extract_strided_slice %72 {offsets = [0, 0], sizes = [8, 96], strides = [1, 1]} : vector<8x128xf32> to vector<8x96xf32>
    %74 = arith.negf %73 : vector<8x96xf32>
    %75 = math.exp %74 : vector<8x96xf32>
    %cst_17 = arith.constant 1.000000e+00 : f32
    %76 = vector.broadcast %cst_17 : f32 to vector<8x96xf32>
    %77 = arith.addf %76, %75 : vector<8x96xf32>
    %78 = arith.divf %76, %77 : vector<8x96xf32>
    %79 = vector.extract_strided_slice %72 {offsets = [0, 96], sizes = [8, 32], strides = [1, 1]} : vector<8x128xf32> to vector<8x32xf32>
    %80 = math.tanh %79 : vector<8x32xf32>
    %81 = vector.extract_strided_slice %78 {offsets = [0, 0], sizes = [8, 32], strides = [1, 1]} : vector<8x96xf32> to vector<8x32xf32>
    %82 = vector.extract_strided_slice %78 {offsets = [0, 32], sizes = [8, 32], strides = [1, 1]} : vector<8x96xf32> to vector<8x32xf32>
    %83 = vector.extract_strided_slice %78 {offsets = [0, 64], sizes = [8, 32], strides = [1, 1]} : vector<8x96xf32> to vector<8x32xf32>
    %84 = arith.mulf %82, %66 : vector<8x32xf32>
    %85 = arith.mulf %81, %80 : vector<8x32xf32>
    %86 = arith.addf %84, %85 : vector<8x32xf32>
    %87 = math.tanh %86 : vector<8x32xf32>
    %88 = arith.mulf %83, %87 : vector<8x32xf32>
    %89 = arith.addf %69, %88 : vector<8x32xf32>
    %90 = vector.extract_strided_slice %6 {offsets = [32, 0], sizes = [8, 128], strides = [1, 1]} : vector<64x128xf32> to vector<8x128xf32>
    %cst_18 = arith.constant dense<0.000000e+00> : vector<8x128xf32>
    %91 = tpu.matmul %88, %1, %cst_18 {dimension_numbers = #tpu.dot_dimension_numbers<[1], [0], [0], [1], [0, 0, 1, 1], [], []>} : vector<8x32xf32>, vector<32x128xf32>, vector<8x128xf32> -> vector<8x128xf32>
    %92 = arith.addf %90, %91 : vector<8x128xf32>
    %93 = vector.extract_strided_slice %92 {offsets = [0, 0], sizes = [8, 96], strides = [1, 1]} : vector<8x128xf32> to vector<8x96xf32>
    %94 = arith.negf %93 : vector<8x96xf32>
    %95 = math.exp %94 : vector<8x96xf32>
    %cst_19 = arith.constant 1.000000e+00 : f32
    %96 = vector.broadcast %cst_19 : f32 to vector<8x96xf32>
    %97 = arith.addf %96, %95 : vector<8x96xf32>
    %98 = arith.divf %96, %97 : vector<8x96xf32>
    %99 = vector.extract_strided_slice %92 {offsets = [0, 96], sizes = [8, 32], strides = [1, 1]} : vector<8x128xf32> to vector<8x32xf32>
    %100 = math.tanh %99 : vector<8x32xf32>
    %101 = vector.extract_strided_slice %98 {offsets = [0, 0], sizes = [8, 32], strides = [1, 1]} : vector<8x96xf32> to vector<8x32xf32>
    %102 = vector.extract_strided_slice %98 {offsets = [0, 32], sizes = [8, 32], strides = [1, 1]} : vector<8x96xf32> to vector<8x32xf32>
    %103 = vector.extract_strided_slice %98 {offsets = [0, 64], sizes = [8, 32], strides = [1, 1]} : vector<8x96xf32> to vector<8x32xf32>
    %104 = arith.mulf %102, %86 : vector<8x32xf32>
    %105 = arith.mulf %101, %100 : vector<8x32xf32>
    %106 = arith.addf %104, %105 : vector<8x32xf32>
    %107 = math.tanh %106 : vector<8x32xf32>
    %108 = arith.mulf %103, %107 : vector<8x32xf32>
    %109 = arith.addf %89, %108 : vector<8x32xf32>
    %110 = vector.extract_strided_slice %6 {offsets = [40, 0], sizes = [8, 128], strides = [1, 1]} : vector<64x128xf32> to vector<8x128xf32>
    %cst_20 = arith.constant dense<0.000000e+00> : vector<8x128xf32>
    %111 = tpu.matmul %108, %1, %cst_20 {dimension_numbers = #tpu.dot_dimension_numbers<[1], [0], [0], [1], [0, 0, 1, 1], [], []>} : vector<8x32xf32>, vector<32x128xf32>, vector<8x128xf32> -> vector<8x128xf32>
    %112 = arith.addf %110, %111 : vector<8x128xf32>
    %113 = vector.extract_strided_slice %112 {offsets = [0, 0], sizes = [8, 96], strides = [1, 1]} : vector<8x128xf32> to vector<8x96xf32>
    %114 = arith.negf %113 : vector<8x96xf32>
    %115 = math.exp %114 : vector<8x96xf32>
    %cst_21 = arith.constant 1.000000e+00 : f32
    %116 = vector.broadcast %cst_21 : f32 to vector<8x96xf32>
    %117 = arith.addf %116, %115 : vector<8x96xf32>
    %118 = arith.divf %116, %117 : vector<8x96xf32>
    %119 = vector.extract_strided_slice %112 {offsets = [0, 96], sizes = [8, 32], strides = [1, 1]} : vector<8x128xf32> to vector<8x32xf32>
    %120 = math.tanh %119 : vector<8x32xf32>
    %121 = vector.extract_strided_slice %118 {offsets = [0, 0], sizes = [8, 32], strides = [1, 1]} : vector<8x96xf32> to vector<8x32xf32>
    %122 = vector.extract_strided_slice %118 {offsets = [0, 32], sizes = [8, 32], strides = [1, 1]} : vector<8x96xf32> to vector<8x32xf32>
    %123 = vector.extract_strided_slice %118 {offsets = [0, 64], sizes = [8, 32], strides = [1, 1]} : vector<8x96xf32> to vector<8x32xf32>
    %124 = arith.mulf %122, %106 : vector<8x32xf32>
    %125 = arith.mulf %121, %120 : vector<8x32xf32>
    %126 = arith.addf %124, %125 : vector<8x32xf32>
    %127 = math.tanh %126 : vector<8x32xf32>
    %128 = arith.mulf %123, %127 : vector<8x32xf32>
    %129 = arith.addf %109, %128 : vector<8x32xf32>
    %130 = vector.extract_strided_slice %6 {offsets = [48, 0], sizes = [8, 128], strides = [1, 1]} : vector<64x128xf32> to vector<8x128xf32>
    %cst_22 = arith.constant dense<0.000000e+00> : vector<8x128xf32>
    %131 = tpu.matmul %128, %1, %cst_22 {dimension_numbers = #tpu.dot_dimension_numbers<[1], [0], [0], [1], [0, 0, 1, 1], [], []>} : vector<8x32xf32>, vector<32x128xf32>, vector<8x128xf32> -> vector<8x128xf32>
    %132 = arith.addf %130, %131 : vector<8x128xf32>
    %133 = vector.extract_strided_slice %132 {offsets = [0, 0], sizes = [8, 96], strides = [1, 1]} : vector<8x128xf32> to vector<8x96xf32>
    %134 = arith.negf %133 : vector<8x96xf32>
    %135 = math.exp %134 : vector<8x96xf32>
    %cst_23 = arith.constant 1.000000e+00 : f32
    %136 = vector.broadcast %cst_23 : f32 to vector<8x96xf32>
    %137 = arith.addf %136, %135 : vector<8x96xf32>
    %138 = arith.divf %136, %137 : vector<8x96xf32>
    %139 = vector.extract_strided_slice %132 {offsets = [0, 96], sizes = [8, 32], strides = [1, 1]} : vector<8x128xf32> to vector<8x32xf32>
    %140 = math.tanh %139 : vector<8x32xf32>
    %141 = vector.extract_strided_slice %138 {offsets = [0, 0], sizes = [8, 32], strides = [1, 1]} : vector<8x96xf32> to vector<8x32xf32>
    %142 = vector.extract_strided_slice %138 {offsets = [0, 32], sizes = [8, 32], strides = [1, 1]} : vector<8x96xf32> to vector<8x32xf32>
    %143 = vector.extract_strided_slice %138 {offsets = [0, 64], sizes = [8, 32], strides = [1, 1]} : vector<8x96xf32> to vector<8x32xf32>
    %144 = arith.mulf %142, %126 : vector<8x32xf32>
    %145 = arith.mulf %141, %140 : vector<8x32xf32>
    %146 = arith.addf %144, %145 : vector<8x32xf32>
    %147 = math.tanh %146 : vector<8x32xf32>
    %148 = arith.mulf %143, %147 : vector<8x32xf32>
    %149 = arith.addf %129, %148 : vector<8x32xf32>
    %150 = vector.extract_strided_slice %6 {offsets = [56, 0], sizes = [8, 128], strides = [1, 1]} : vector<64x128xf32> to vector<8x128xf32>
    %cst_24 = arith.constant dense<0.000000e+00> : vector<8x128xf32>
    %151 = tpu.matmul %148, %1, %cst_24 {dimension_numbers = #tpu.dot_dimension_numbers<[1], [0], [0], [1], [0, 0, 1, 1], [], []>} : vector<8x32xf32>, vector<32x128xf32>, vector<8x128xf32> -> vector<8x128xf32>
    %152 = arith.addf %150, %151 : vector<8x128xf32>
    %153 = vector.extract_strided_slice %152 {offsets = [0, 0], sizes = [8, 96], strides = [1, 1]} : vector<8x128xf32> to vector<8x96xf32>
    %154 = arith.negf %153 : vector<8x96xf32>
    %155 = math.exp %154 : vector<8x96xf32>
    %cst_25 = arith.constant 1.000000e+00 : f32
    %156 = vector.broadcast %cst_25 : f32 to vector<8x96xf32>
    %157 = arith.addf %156, %155 : vector<8x96xf32>
    %158 = arith.divf %156, %157 : vector<8x96xf32>
    %159 = vector.extract_strided_slice %152 {offsets = [0, 96], sizes = [8, 32], strides = [1, 1]} : vector<8x128xf32> to vector<8x32xf32>
    %160 = math.tanh %159 : vector<8x32xf32>
    %161 = vector.extract_strided_slice %158 {offsets = [0, 0], sizes = [8, 32], strides = [1, 1]} : vector<8x96xf32> to vector<8x32xf32>
    %162 = vector.extract_strided_slice %158 {offsets = [0, 32], sizes = [8, 32], strides = [1, 1]} : vector<8x96xf32> to vector<8x32xf32>
    %163 = vector.extract_strided_slice %158 {offsets = [0, 64], sizes = [8, 32], strides = [1, 1]} : vector<8x96xf32> to vector<8x32xf32>
    %164 = arith.mulf %162, %146 : vector<8x32xf32>
    %165 = arith.mulf %161, %160 : vector<8x32xf32>
    %166 = arith.addf %164, %165 : vector<8x32xf32>
    %167 = math.tanh %166 : vector<8x32xf32>
    %168 = arith.mulf %163, %167 : vector<8x32xf32>
    %169 = arith.addf %149, %168 : vector<8x32xf32>
    %c0_26 = arith.constant 0 : index
    %c0_27 = arith.constant 0 : index
    %170 = vector.load %arg4[%c0_26, %c0_27] : memref<1x32xf32, #tpu.memory_space<vmem>>, vector<1x32xf32>
    %171 = vector.broadcast %170 : vector<1x32xf32> to vector<8x32xf32>
    %172 = arith.mulf %169, %171 : vector<8x32xf32>
    %cst_28 = arith.constant dense<0.000000e+00> : vector<8xf32>
    %173 = vector.multi_reduction <add>, %172, %cst_28 [1] : vector<8x32xf32> to vector<8xf32>
    %174 = vector.shape_cast %173 : vector<8xf32> to vector<8x1xf32>
    %c0_29 = arith.constant 0 : index
    %c0_30 = arith.constant 0 : index
    %175 = vector.load %arg5[%c0_29, %c0_30] : memref<1x1xf32, #tpu.memory_space<vmem>>, vector<1x1xf32>
    %176 = vector.broadcast %175 : vector<1x1xf32> to vector<8x1xf32>
    %177 = arith.addf %174, %176 : vector<8x1xf32>
    %c0_31 = arith.constant 0 : index
    %c0_32 = arith.constant 0 : index
    %178 = vector.load %arg6[%c0_31, %c0_32] : memref<8x1xf32, #tpu.memory_space<vmem>>, vector<8x1xf32>
    tpu.vector_store %arg6[%c0_31, %c0_32], %177 {strides = array<i32>} : memref<8x1xf32, #tpu.memory_space<vmem>>, vector<8x1xf32>,
    return
  }
}

</mosaic_0001>

<bundles_post_ra>
// kernel: tpu_custom_call.1
= control target key start
LH: loop header
LB: loop body
LE: loop exit
PB: predicated region body
PF: predicated region fallthrough
CT: control target
= control target key end

     0   :  { %vm46_vm0 = vcmask 130048   ;;  %v1315_v0 = vmov 0.0|0.0   ;;  %vm1316_vm1 = vmmov 0   ;;  %v1317_v4 = vmov 0.0   ;;  %s1318_s13 = smov 32   ;;  %s1537_s1 = inlined_call_operand.vmem [shape: f32[16,128], index: 1, kind: input, shape index: {}]   ;;  %s1538_s2 = inlined_call_operand.vmem [shape: f32[32,128], index: 2, kind: input, shape index: {}]   ;;  %s1539_s0 = inlined_call_operand.vmem [shape: f32[64,16], index: 0, kind: input, shape index: {}]   ;;  %s1540_s3 = inlined_call_operand.vmem [shape: f32[1,128], index: 3, kind: input, shape index: {}]   ;;  %s1541_s4 = inlined_call_operand.vmem [shape: f32[1,32], index: 4, kind: input, shape index: {}]   ;;  %s1542_s5 = inlined_call_operand.<no memory space> [shape: f32[1,1], index: 5, kind: input, shape index: {}]   ;;  %s1543_s6 = inlined_call_operand.vmem [shape: f32[8,1], index: 6, kind: output, shape index: {}]  }
   0x1   :  { %1198 = vmatprep.subr.bf16.mxu1 %v1315_v0  ;;  %v25_v1 = vld [vmem:[%s1537_s1] sm:$0xff]  ;;  %v26_v2 = vld [vmem:[%s1537_s1 + $0x8] sm:$0xff]  ;;  %1114 = vmatprep.mubr.msk.f32.mxu1 %vm1316_vm1, %v1317_v4  ;;  %v29_v9 = vld [vmem:[%s1538_s2 + $0x10] sm:$0xff]  ;;  %vm176_vm2 = vcmask 261120   ;;  %vm1008_vm3 = vcmask 7168  }
   0x2   :  { %v27_v3 = vld [vmem:[%s1538_s2] sm:$0xff]  ;;  %v1194_v5 = vpack.c.bf16 %v26_v2, %v25_v1  ;;  %v28_v6 = vld [vmem:[%s1538_s2 + $0x8] sm:$0xff]  ;;  %v30_v10 = vld [vmem:[%s1538_s2 + $0x18] sm:$0xff] }
   0x3   :  { %v32_v7 = vld [vmem:[%s1539_s0] sm:$0xff]  ;;  %v1373_v8 = vpack.c.bf16 %v28_v6, %v27_v3  ;;  %v33_v11 = vld [vmem:[%s1539_s0 + $0x8] sm:$0xff]  ;;  %v1386_v12 = vpack.c.bf16 %v30_v10, %v29_v9  ;;  %v34_v48 = vld [vmem:[%s1539_s0 + $0x10] sm:$0xff] }
   0x4   :  { %1094 = vmatprep.mubr.msk.f32.mxu0 %vm46_vm0, %v32_v7  ;;  %1195 = vmatprep.subr.bf16.mxu0 %v1194_v5  ;;  %v1407_v13 = vld [vmem:[%s1540_s3] ss:$0 sm:$0xff]  ;;  %s1319_s3 = smov 64   ;;  %v35_v49 = vld [vmem:[%s1539_s0 + $0x18] sm:$0xff]  ;;  %v37_v51 = vld [vmem:[%s1539_s0 + $0x28] sm:$0xff] }
   0x5   :  { %1200 = vmatpush3.bf16.msra.mxu1 %v1373_v8  ;;  %1197 = vmatpush3.bf16.msra.mxu0 %v1194_v5  ;;  %v36_v50 = vld [vmem:[%s1539_s0 + $0x20] sm:$0xff]  ;;  %v38_v52 = vld [vmem:[%s1539_s0 + $0x30] sm:$0xff]  ;;  %v39_v53 = vld [vmem:[%s1539_s0 + $0x38] sm:$0xff] }
   0x6   :  { %1201 = vmatprep.subr.bf16.mxu1 %v1315_v0  ;;  %1210 = vmatprep.subr.bf16.mxu0 %v1315_v0 }
   0x8   :  { %1095 = vmatmul.mubr.msk.f32.vlgmr.msra.gmra.mrb[0].mxu0 %vm46_vm0, %v33_v11 }
   0x9   :  { %1203 = vmatpush3.bf16.msra.mxu1 %v1386_v12  ;;  %1212 = vmatpush3.bf16.msra.mxu0 %v1373_v8 }
   0xa   :  { %1204 = vmatprep.subr.bf16.mxu1 %v1315_v0  ;;  %1213 = vmatprep.subr.bf16.mxu0 %v1315_v0 }
   0xb   :  { %1097 = vmatprep.mubr.msk.f32.mxu0 %vm46_vm0, %v34_v48 }
   0xc   :  { %1115 = vmatmul.mubr.f32.vlgmr.msra.gmra.mrb[0].mxu1 %v1317_v4  ;;  %1098 = vmatmul.mubr.msk.f32.gmra.mrb[2].mxu0 %vm46_vm0, %v35_v49 }
   0xd   :  { %1206 = vmatpush3.bf16.msra.mxu1 %v1373_v8  ;;  %1125 = vmatprep.mubr.msk.f32.mxu1 %vm1316_vm1, %v1317_v4 }
   0xe   :  { %1207 = vmatprep.subr.bf16.mxu1 %v1315_v0  ;;  %1215 = vmatpush3.bf16.msra.mxu0 %v1386_v12 }
   0xf   :  { %1222 = vmatprep.subr.bf16.mxu0 %v1315_v0  ;;  %1100 = vmatprep.mubr.msk.f32.mxu0 %vm46_vm0, %v36_v50 }
  0x10   :  { %1101 = vmatmul.mubr.msk.f32.gmra.mrb[4].mxu0 %vm46_vm0, %v37_v51 }
  0x11   :  { %1209 = vmatpush3.bf16.msra.mxu1 %v1386_v12  ;;  %1103 = vmatprep.mubr.msk.f32.mxu0 %vm46_vm0, %v38_v52 }
  0x12   :  { %1216 = vmatprep.subr.bf16.mxu1 %v1315_v0 }
  0x14   :  { %1104 = vmatmul.mubr.msk.f32.gmra.mrb[6].mxu0 %vm46_vm0, %v39_v53 }
  0x15   :  { %1136 = vmatprep.mubr.msk.f32.mxu0 %vm1316_vm1, %v1317_v4 }
  0xdb   :  { %v1096_v14 = vpop.f32.mrb[0].mxu0 }
  0xdc   :  { %v137_v15 = vpop.f32.mrb[1].mxu0  ;;  %v143_v34 = vadd.f32 %v1096_v14, %v1407_v13 }
  0xdd   :  { %v138_v16 = vadd.f32 %v1407_v13, %v137_v15 }
  0xdf   :  { %v246_v17 = vpop.f32.mrb[0].mxu1  ;;  %v1099_v57 = vpop.f32.mrb[2].mxu0 }
  0xe0   :  { %v250_v18 = vadd.f32 %v246_v17, %v138_v16  ;;  %v1116_v19 = vpop.f32.mrb[1].mxu1  ;;  %v147_v58 = vpop.f32.mrb[3].mxu0 }
  0xe1   :  { %v148_v1 = vadd.f32 %v1407_v13, %v147_v58 }
  0xe2   :  { %1251 = vtanh.f32 %v250_v18  ;;  %v1023_v21 = vmul.f32 -1.442695, %v250_v18 }
  0xe3   :  { %v1455_v59 = vpop.f32.mrb[4].mxu0 }
  0xe4   :  { %1253 = vpow2.f32 %v1023_v21  ;;  %v1457_v60 = vpop.f32.mrb[5].mxu0 }
  0xe7   :  { %v1459_v61 = vpop.f32.mrb[6].mxu0 }
  0xe8   :  { %v1461_v62 = vpop.f32.mrb[7].mxu0 }
  0xec   :  { %v1252_v20 = vpop.eup %1251 }
  0xed   :  { %260 = vrot.lane.b32.xlu0 %v1252_v20, %s1318_s13 }
  0xee   :  { %v1254_v22 = vpop.eup %1253 }
  0xef   :  { %v254_v23 = vadd.f32 1.0, %v1254_v22 }
  0xf1   :  { %1255 = vrcp.f32 %v254_v23 }
  0xfb   :  { %v1256_v24 = vpop.eup %1255 }
  0xfc   :  { %v258_v27 = vmul.f32 0.0, %v1256_v24 }
 0x15f   :  { %v261_v25 = vpop.permute.xlu0 %260 }
 0x160   :  { %v263_v26 = vmul.f32 %v1256_v24, %v261_v25  ;;  %v153_v25 = vadd.f32 %v1099_v57, %v1407_v13 }
 0x162   :  { %265 = vrot.lane.b32.xlu0 %v263_v26, %s1318_s13 }
 0x1d4   :  { %v266_v28 = vpop.permute.xlu0 %265 }
 0x1d5   :  { %v268_v29 = vadd.f32 %v266_v28, %v258_v27 }
 0x1d7   :  { %1257 = vtanh.f32 %v268_v29 }
 0x1e1   :  { %v1258_v30 = vpop.eup %1257 }
 0x1e2   :  { %271 = vrot.lane.b32.xlu1 %v1258_v30, %s1318_s13 }
 0x254   :  { %v272_v31 = vpop.permute.xlu1 %271 }
 0x255   :  { %v1413_v32 = vmul.f32 %v1256_v24, %v272_v31 }
 0x257   :  { %277 = vrot.lane.b32.xlu1 %v1413_v32, %s1319_s3 }
 0x2c9   :  { %v278_v33 = vpop.permute.xlu1 %277 }
 0x2ca   :  { %1126 = vmatmul.mubr.msk.f32.vlgmr.msra.gmra.mrb[2].mxu1 %vm176_vm2, %v278_v33 }
 0x2cb   :  { %1218 = vmatpush3.bf16.msra.mxu1 %v1373_v8  ;;  %1147 = vmatprep.mubr.msk.f32.mxu1 %vm1316_vm1, %v1317_v4 }
 0x2cc   :  { %1219 = vmatprep.subr.bf16.mxu1 %v1315_v0 }
 0x2cf   :  { %1221 = vmatpush3.bf16.msra.mxu1 %v1386_v12 }
 0x2d0   :  { %1228 = vmatprep.subr.bf16.mxu1 %v1315_v0 }
 0x39d   :  { %v347_v35 = vpop.f32.mrb[2].mxu1 }
 0x39e   :  { %v351_v36 = vadd.f32 %v347_v35, %v143_v34  ;;  %v1127_v37 = vpop.f32.mrb[3].mxu1 }
 0x3a0   :  { %1259 = vtanh.f32 %v351_v36  ;;  %v1025_v39 = vmul.f32 -1.442695, %v351_v36 }
 0x3a2   :  { %1261 = vpow2.f32 %v1025_v39 }
 0x3aa   :  { %v1260_v38 = vpop.eup %1259 }
 0x3ab   :  { %361 = vrot.lane.b32.xlu0 %v1260_v38, %s1318_s13 }
 0x3ac   :  { %v1262_v40 = vpop.eup %1261 }
 0x3ad   :  { %v355_v41 = vadd.f32 1.0, %v1262_v40 }
 0x3af   :  { %1263 = vrcp.f32 %v355_v41 }
 0x3b9   :  { %v1264_v42 = vpop.eup %1263 }
 0x3ba   :  { %v359_v45 = vmul.f32 %v1264_v42, %v268_v29 }
 0x41d   :  { %v362_v43 = vpop.permute.xlu0 %361 }
 0x41e   :  { %v364_v44 = vmul.f32 %v1264_v42, %v362_v43 }
 0x420   :  { %366 = vrot.lane.b32.xlu1 %v364_v44, %s1318_s13  ;;  %v158_v44 = vadd.f32 %v1407_v13, %v1457_v60 }
 0x492   :  { %v367_v46 = vpop.permute.xlu1 %366 }
 0x493   :  { %v369_v47 = vadd.f32 %v367_v46, %v359_v45 }
 0x495   :  { %1265 = vtanh.f32 %v369_v47 }
 0x49f   :  { %v1266_v54 = vpop.eup %1265 }
 0x4a0   :  { %372 = vrot.lane.b32.xlu0 %v1266_v54, %s1318_s13 }
 0x512   :  { %v373_v55 = vpop.permute.xlu0 %372 }
 0x513   :  { %v375_v56 = vmul.f32 %v1264_v42, %v373_v55 }
 0x515   :  { %378 = vrot.lane.b32.xlu1 %v375_v56, %s1319_s3  ;;  %v376_v21 = vadd.f32 %v375_v56, %v1413_v32 }
 0x587   :  { %v379_v63 = vpop.permute.xlu1 %378 }
 0x588   :  { %1137 = vmatmul.mubr.msk.f32.vlgmr.msra.gmra.mrb[8].mxu0 %vm176_vm2, %v379_v63 }
 0x589   :  { %1224 = vmatpush3.bf16.msra.mxu0 %v1373_v8  ;;  %1158 = vmatprep.mubr.msk.f32.mxu0 %vm1316_vm1, %v1317_v4 }
 0x58a   :  { %1225 = vmatprep.subr.bf16.mxu0 %v1315_v0 }
 0x58d   :  { %1227 = vmatpush3.bf16.msra.mxu0 %v1386_v12 }
 0x58e   :  { %1234 = vmatprep.subr.bf16.mxu0 %v1315_v0 }
 0x65b   :  { %v448_v2 = vpop.f32.mrb[8].mxu0 }
 0x65c   :  { %v452_v3 = vadd.f32 %v448_v2, %v148_v1  ;;  %v1138_v5 = vpop.f32.mrb[9].mxu0 }
 0x65e   :  { %1267 = vtanh.f32 %v452_v3  ;;  %v1027_v7 = vmul.f32 -1.442695, %v452_v3  ;;  %v163_v3 = vadd.f32 %v1455_v59, %v1407_v13 }
 0x660   :  { %1269 = vpow2.f32 %v1027_v7 }
 0x668   :  { %v1268_v6 = vpop.eup %1267 }
 0x669   :  { %462 = vrot.lane.b32.xlu0 %v1268_v6, %s1318_s13 }
 0x66a   :  { %v1270_v9 = vpop.eup %1269 }
 0x66b   :  { %v456_v10 = vadd.f32 1.0, %v1270_v9 }
 0x66d   :  { %1271 = vrcp.f32 %v456_v10 }
 0x677   :  { %v1272_v11 = vpop.eup %1271 }
 0x678   :  { %v460_v16 = vmul.f32 %v1272_v11, %v369_v47 }
 0x6db   :  { %v463_v14 = vpop.permute.xlu0 %462 }
 0x6dc   :  { %v465_v15 = vmul.f32 %v1272_v11, %v463_v14 }
 0x6de   :  { %467 = vrot.lane.b32.xlu1 %v465_v15, %s1318_s13 }
 0x750   :  { %v468_v17 = vpop.permute.xlu1 %467 }
 0x751   :  { %v470_v18 = vadd.f32 %v468_v17, %v460_v16 }
 0x753   :  { %1273 = vtanh.f32 %v470_v18 }
 0x75d   :  { %v1274_v19 = vpop.eup %1273 }
 0x75e   :  { %473 = vrot.lane.b32.xlu0 %v1274_v19, %s1318_s13 }
 0x7d0   :  { %v474_v20 = vpop.permute.xlu0 %473 }
 0x7d1   :  { %v476_v22 = vmul.f32 %v1272_v11, %v474_v20 }
 0x7d3   :  { %v477_v23 = vadd.f32 %v476_v22, %v376_v21  ;;  %479 = vrot.lane.b32.xlu1 %v476_v22, %s1319_s3  ;;  %v168_v21 = vadd.f32 %v1407_v13, %v1461_v62 }
 0x845   :  { %v480_v24 = vpop.permute.xlu1 %479 }
 0x846   :  { %1148 = vmatmul.mubr.msk.f32.vlgmr.msra.gmra.mrb[4].mxu1 %vm176_vm2, %v480_v24 }
 0x847   :  { %1230 = vmatpush3.bf16.msra.mxu1 %v1373_v8  ;;  %1169 = vmatprep.mubr.msk.f32.mxu1 %vm1316_vm1, %v1317_v4 }
 0x848   :  { %1231 = vmatprep.subr.bf16.mxu1 %v1315_v0 }
 0x84b   :  { %1233 = vmatpush3.bf16.msra.mxu1 %v1386_v12 }
 0x84c   :  { %1240 = vmatprep.subr.bf16.mxu1 %v1315_v0 }
 0x919   :  { %v549_v26 = vpop.f32.mrb[4].mxu1 }
 0x91a   :  { %v553_v27 = vadd.f32 %v549_v26, %v153_v25  ;;  %v1149_v28 = vpop.f32.mrb[5].mxu1 }
 0x91c   :  { %1275 = vtanh.f32 %v553_v27  ;;  %v1029_v30 = vmul.f32 -1.442695, %v553_v27 }
 0x91e   :  { %1277 = vpow2.f32 %v1029_v30 }
 0x926   :  { %v1276_v29 = vpop.eup %1275 }
 0x927   :  { %563 = vrot.lane.b32.xlu0 %v1276_v29, %s1318_s13 }
 0x928   :  { %v1278_v31 = vpop.eup %1277 }
 0x929   :  { %v557_v32 = vadd.f32 1.0, %v1278_v31 }
 0x92b   :  { %1279 = vrcp.f32 %v557_v32 }
 0x935   :  { %v1280_v33 = vpop.eup %1279 }
 0x936   :  { %v561_v36 = vmul.f32 %v1280_v33, %v470_v18 }
 0x999   :  { %v564_v34 = vpop.permute.xlu0 %563 }
 0x99a   :  { %v566_v35 = vmul.f32 %v1280_v33, %v564_v34 }
 0x99c   :  { %568 = vrot.lane.b32.xlu1 %v566_v35, %s1318_s13 }
 0xa0e   :  { %v569_v37 = vpop.permute.xlu1 %568 }
 0xa0f   :  { %v571_v38 = vadd.f32 %v569_v37, %v561_v36 }
 0xa11   :  { %1281 = vtanh.f32 %v571_v38 }
 0xa1b   :  { %v1282_v39 = vpop.eup %1281 }
 0xa1c   :  { %574 = vrot.lane.b32.xlu0 %v1282_v39, %s1318_s13  ;;  %v173_v39 = vadd.f32 %v1459_v61, %v1407_v13  ;;  %v1038_v13 = vld [vmem:[%s1541_s4] ss:$0 sm:$0xff] }
 0xa8e   :  { %v575_v40 = vpop.permute.xlu0 %574 }
 0xa8f   :  { %v577_v41 = vmul.f32 %v1280_v33, %v575_v40 }
 0xa91   :  { %v578_v42 = vadd.f32 %v577_v41, %v477_v23  ;;  %580 = vrot.lane.b32.xlu1 %v577_v41, %s1319_s3 }
 0xb03   :  { %v581_v43 = vpop.permute.xlu1 %580 }
 0xb04   :  { %1159 = vmatmul.mubr.msk.f32.vlgmr.msra.gmra.mrb[10].mxu0 %vm176_vm2, %v581_v43 }
 0xb05   :  { %1236 = vmatpush3.bf16.msra.mxu0 %v1373_v8  ;;  %1180 = vmatprep.mubr.msk.f32.mxu0 %vm1316_vm1, %v1317_v4 }
 0xb06   :  { %1237 = vmatprep.subr.bf16.mxu0 %v1315_v0 }
 0xb09   :  { %1239 = vmatpush3.bf16.msra.mxu0 %v1386_v12 }
 0xbd7   :  { %v650_v45 = vpop.f32.mrb[10].mxu0 }
 0xbd8   :  { %v654_v46 = vadd.f32 %v650_v45, %v158_v44  ;;  %v1160_v47 = vpop.f32.mrb[11].mxu0 }
 0xbda   :  { %1283 = vtanh.f32 %v654_v46  ;;  %v1031_v49 = vmul.f32 -1.442695, %v654_v46 }
 0xbdc   :  { %1285 = vpow2.f32 %v1031_v49 }
 0xbe4   :  { %v1284_v48 = vpop.eup %1283 }
 0xbe5   :  { %664 = vrot.lane.b32.xlu0 %v1284_v48, %s1318_s13 }
 0xbe6   :  { %v1286_v50 = vpop.eup %1285 }
 0xbe7   :  { %v658_v51 = vadd.f32 1.0, %v1286_v50 }
 0xbe9   :  { %1287 = vrcp.f32 %v658_v51 }
 0xbf3   :  { %v1288_v52 = vpop.eup %1287 }
 0xbf4   :  { %v662_v55 = vmul.f32 %v1288_v52, %v571_v38 }
 0xc57   :  { %v665_v53 = vpop.permute.xlu0 %664 }
 0xc58   :  { %v667_v54 = vmul.f32 %v1288_v52, %v665_v53  ;;  %v11_v53 = vstv %s1542_s5 }
 0xc59   :  { %12 = vst [vmem:[#allocation2] sm:$0x1] %v11_v53 }
 0xc5a   :  { %669 = vrot.lane.b32.xlu1 %v667_v54, %s1318_s13 }
 0xccc   :  { %v670_v56 = vpop.permute.xlu1 %669 }
 0xccd   :  { %v672_v57 = vadd.f32 %v670_v56, %v662_v55 }
 0xccf   :  { %1289 = vtanh.f32 %v672_v57 }
 0xcd9   :  { %v1290_v58 = vpop.eup %1289 }
 0xcda   :  { %675 = vrot.lane.b32.xlu0 %v1290_v58, %s1318_s13 }
 0xd4c   :  { %v676_v60 = vpop.permute.xlu0 %675 }
 0xd4d   :  { %v678_v63 = vmul.f32 %v1288_v52, %v676_v60 }
 0xd4f   :  { %v679_v1 = vadd.f32 %v678_v63, %v578_v42  ;;  %681 = vrot.lane.b32.xlu1 %v678_v63, %s1319_s3 }
 0xdc1   :  { %v682_v2 = vpop.permute.xlu1 %681 }
 0xdc2   :  { %1170 = vmatmul.mubr.msk.f32.vlgmr.msra.gmra.mrb[6].mxu1 %vm176_vm2, %v682_v2 }
 0xdc3   :  { %1242 = vmatpush3.bf16.msra.mxu1 %v1373_v8  ;;  %1191 = vmatprep.mubr.msk.f32.mxu1 %vm1316_vm1, %v1317_v4 }
 0xdc4   :  { %1243 = vmatprep.subr.bf16.mxu1 %v1315_v0 }
 0xdc7   :  { %1245 = vmatpush3.bf16.msra.mxu1 %v1386_v12 }
 0xe95   :  { %v751_v5 = vpop.f32.mrb[6].mxu1 }
 0xe96   :  { %v755_v6 = vadd.f32 %v751_v5, %v163_v3  ;;  %v1171_v7 = vpop.f32.mrb[7].mxu1 }
 0xe98   :  { %1291 = vtanh.f32 %v755_v6  ;;  %v1033_v10 = vmul.f32 -1.442695, %v755_v6 }
 0xe9a   :  { %1293 = vpow2.f32 %v1033_v10 }
 0xea2   :  { %v1292_v9 = vpop.eup %1291 }
 0xea3   :  { %765 = vrot.lane.b32.xlu0 %v1292_v9, %s1318_s13 }
 0xea4   :  { %v1294_v8 = vpop.eup %1293 }
 0xea5   :  { %v759_v11 = vadd.f32 1.0, %v1294_v8 }
 0xea7   :  { %1295 = vrcp.f32 %v759_v11 }
 0xeb1   :  { %v1296_v4 = vpop.eup %1295 }
 0xeb2   :  { %v763_v12 = vmul.f32 %v1296_v4, %v672_v57 }
 0xf15   :  { %v766_v14 = vpop.permute.xlu0 %765 }
 0xf16   :  { %v768_v0 = vmul.f32 %v1296_v4, %v766_v14 }
 0xf18   :  { %770 = vrot.lane.b32.xlu1 %v768_v0, %s1318_s13 }
 0xf8a   :  { %v771_v15 = vpop.permute.xlu1 %770 }
 0xf8b   :  { %v773_v59 = vadd.f32 %v771_v15, %v763_v12 }
 0xf8d   :  { %1297 = vtanh.f32 %v773_v59 }
 0xf97   :  { %v1298_v16 = vpop.eup %1297 }
 0xf98   :  { %776 = vrot.lane.b32.xlu0 %v1298_v16, %s1318_s13 }
0x100a   :  { %v777_v17 = vpop.permute.xlu0 %776 }
0x100b   :  { %v779_v18 = vmul.f32 %v1296_v4, %v777_v17 }
0x100d   :  { %v780_v19 = vadd.f32 %v779_v18, %v679_v1  ;;  %782 = vrot.lane.b32.xlu1 %v779_v18, %s1319_s3  ;;  %v1039_v1 = vld [vmem:[#allocation2] ss:$0 sm:$0xff] }
0x107f   :  { %v783_v20 = vpop.permute.xlu1 %782 }
0x1080   :  { %1181 = vmatmul.mubr.msk.f32.vlgmr.msra.gmra.mrb[12].mxu0 %vm176_vm2, %v783_v20 }
0x1153   :  { %v852_v22 = vpop.f32.mrb[12].mxu0 }
0x1154   :  { %v856_v23 = vadd.f32 %v852_v22, %v168_v21  ;;  %v1182_v24 = vpop.f32.mrb[13].mxu0 }
0x1156   :  { %1299 = vtanh.f32 %v856_v23  ;;  %v1035_v26 = vmul.f32 -1.442695, %v856_v23 }
0x1158   :  { %1301 = vpow2.f32 %v1035_v26 }
0x1160   :  { %v1300_v25 = vpop.eup %1299 }
0x1161   :  { %866 = vrot.lane.b32.xlu0 %v1300_v25, %s1318_s13 }
0x1162   :  { %v1302_v27 = vpop.eup %1301 }
0x1163   :  { %v860_v28 = vadd.f32 1.0, %v1302_v27 }
0x1165   :  { %1303 = vrcp.f32 %v860_v28 }
0x116f   :  { %v1304_v29 = vpop.eup %1303 }
0x1170   :  { %v864_v32 = vmul.f32 %v1304_v29, %v773_v59 }
0x11d3   :  { %v867_v30 = vpop.permute.xlu0 %866 }
0x11d4   :  { %v869_v31 = vmul.f32 %v1304_v29, %v867_v30 }
0x11d6   :  { %871 = vrot.lane.b32.xlu1 %v869_v31, %s1318_s13 }
0x1248   :  { %v872_v33 = vpop.permute.xlu1 %871 }
0x1249   :  { %v874_v62 = vadd.f32 %v872_v33, %v864_v32 }
0x124b   :  { %1305 = vtanh.f32 %v874_v62 }
0x1255   :  { %v1306_v34 = vpop.eup %1305 }
0x1256   :  { %877 = vrot.lane.b32.xlu0 %v1306_v34, %s1318_s13 }
0x12c8   :  { %v878_v35 = vpop.permute.xlu0 %877 }
0x12c9   :  { %v880_v36 = vmul.f32 %v1304_v29, %v878_v35 }
0x12cb   :  { %v881_v37 = vadd.f32 %v880_v36, %v780_v19  ;;  %883 = vrot.lane.b32.xlu1 %v880_v36, %s1319_s3 }
0x133d   :  { %v884_v38 = vpop.permute.xlu1 %883 }
0x133e   :  { %1192 = vmatmul.mubr.msk.f32.vlgmr.msra.gmra.mrb[8].mxu1 %vm176_vm2, %v884_v38 }
0x1411   :  { %v953_v40 = vpop.f32.mrb[8].mxu1 }
0x1412   :  { %v957_v41 = vadd.f32 %v953_v40, %v173_v39  ;;  %v1193_v42 = vpop.f32.mrb[9].mxu1 }
0x1414   :  { %1307 = vtanh.f32 %v957_v41  ;;  %v1037_v44 = vmul.f32 -1.442695, %v957_v41 }
0x1416   :  { %1309 = vpow2.f32 %v1037_v44 }
0x141e   :  { %v1308_v43 = vpop.eup %1307 }
0x141f   :  { %967 = vrot.lane.b32.xlu0 %v1308_v43, %s1318_s13 }
0x1420   :  { %v1310_v45 = vpop.eup %1309 }
0x1421   :  { %v961_v46 = vadd.f32 1.0, %v1310_v45 }
0x1423   :  { %1311 = vrcp.f32 %v961_v46 }
0x142d   :  { %v1312_v47 = vpop.eup %1311 }
0x142e   :  { %v965_v61 = vmul.f32 %v1312_v47, %v874_v62 }
0x1491   :  { %v968_v48 = vpop.permute.xlu0 %967 }
0x1492   :  { %v970_v49 = vmul.f32 %v1312_v47, %v968_v48 }
0x1494   :  { %972 = vrot.lane.b32.xlu1 %v970_v49, %s1318_s13 }
0x1498   :  { %989 = vrot.lane.b32.xlu1 %v1038_v13, %s1319_s3 }
0x1506   :  { %v973_v50 = vpop.permute.xlu1 %972 }
0x1507   :  { %v975_v51 = vadd.f32 %v973_v50, %v965_v61 }
0x1509   :  { %1313 = vtanh.f32 %v975_v51 }
0x150a   :  { %v990_v56 = vpop.permute.xlu1 %989 }
0x1513   :  { %v1314_v52 = vpop.eup %1313 }
0x1514   :  { %978 = vrot.lane.b32.xlu0 %v1314_v52, %s1318_s13 }
0x1586   :  { %v979_v54 = vpop.permute.xlu0 %978 }
0x1587   :  { %v981_v55 = vmul.f32 %v1312_v47, %v979_v54 }
0x1589   :  { %v982_v57 = vadd.f32 %v981_v55, %v881_v37 }
0x158b   :  { %v992_v58 = vmul.f32 %v990_v56, %v982_v57 }
0x158d   :  { %994 = vrot.lane.b32.xlu0 %v992_v58, %s1319_s3 }
0x15ff   :  { %v995_v60 = vpop.permute.xlu0 %994 }
0x1600   :  { %v997_v63 = vsel %vm176_vm2, %v995_v60, 0.0 }
0x1601   :  { %998 = vadd.xlane.f32.xlu1 %v997_v63 }
0x168e   :  { %v999_v2 = vpop.xlane.xlu1 %998 }
0x168f   :  { %v1007_v3 = vadd.f32 %v1039_v1, %v999_v2 }
0x1691   :  { %1009 = vst.msk [vmem:[%s1543_s6] sm:$0xff] %vm1008_vm3, %v1007_v3 }

</bundles_post_ra>
